<compile_context>
chip_gen: v7x
topology: tpu7x:2x2x1
jax: 0.10.0
libtpu: 0.0.40
codegen_flags: <defaults>
</compile_context>

<pallas_src>
import jax
import jax.numpy as jnp
import numpy as np
from jax.experimental import pallas as pl
from jax.experimental.pallas import tpu as pltpu


def _attention_kernel(q_ref, ke_ref, bias_ref, wq_ref, wv_ref, o_ref):
    # Shapes (batch block Bblk always on the lane axis):
    #   q_ref    (H, Bblk)         query^T
    #   ke_ref   (Tk, H+E, Bblk)   [keys ; encoded_input] stacked on features
    #   bias_ref (Tk, Bblk)        additive mask bias (-1e10 where padded)
    #   wq_ref   (H, H)            W_query weight (out, in)
    #   wv_ref   (H, H+E)          [W_key | W_c_s] stacked weight (out, in)
    #   o_ref    (H, Bblk)         output^T (lane-dense store)
    qT = q_ref[...]
    bias = bias_ref[...]
    wq = wq_ref[...]
    wv = wv_ref[...]

    tk = ke_ref.shape[0]
    h = qT.shape[0]

    # 1) Query projection on the MXU; batch is the result (lane / N) axis.
    qpT = jnp.dot(wq, qT, preferred_element_type=jnp.float32)          # (H, Bblk)

    # 2) Attention scores on the VPU: broadcast-multiply + reduce over the
    #    feature (sublane) axis.  No per-batch tiny MXU matmuls.
    rows = []
    for k in range(tk):
        keys_k = ke_ref[k][0:h, :]                                      # (H, Bblk)
        rows.append(jnp.sum(keys_k * qpT, axis=0, keepdims=True))       # (1, Bblk)
    scores = jnp.concatenate(rows, axis=0) + bias                       # (Tk, Bblk)

    # 3) Masked softmax over Tk (sublanes); every lane (= batch element) live.
    smax = jnp.max(scores, axis=0, keepdims=True)
    p = jnp.exp(scores - smax)
    denom = jnp.sum(p, axis=0, keepdims=True)
    weights = p * (1.0 / denom)          # exact divide (approx recip broke 1e-4 check)

    # 4) Pool the *inputs* with the attention weights (linearity of the value
    #    projection: sum_k w_k * (Wv ke_k) == Wv (sum_k w_k ke_k)).
    ctx = weights[0:1, :] * ke_ref[0]                                    # (H+E, Bblk)
    for k in range(1, tk):
        ctx = ctx + weights[k:k + 1, :] * ke_ref[k]

    # 5) Single value-projection matmul, batch on lanes; lane-dense store.
    o_ref[...] = jnp.dot(wv, ctx, preferred_element_type=jnp.float32).astype(o_ref.dtype)


def _pick_block_b(b, max_block=1024):
    """Batch (lane-axis) block size.

    Prefers a multiple of 128 dividing B (capped at max_block) and, when
    possible, >= 2 grid steps so v7x megacore can shard the parallel axis.
    Small / irregular batches fall back to a single block covering everything.
    """
    if b % 128 != 0:
        return b
    blk = min(max_block, b)
    if blk == b and b >= 256:
        blk = b // 2                       # guarantee >= 2 grid steps
    blk -= blk % 128
    while blk > 128 and b % blk != 0:
        blk -= 128
    if blk <= 0 or b % blk != 0:
        return b
    return blk


def attention_forward(query, keys, encoded_input, padding_mask, wq, wk, wcs):
    """Pallas implementation of Attention.forward. Returns [B, H]."""
    B, Tq, H = query.shape
    assert Tq == 1, "weights * values broadcast in the reference module implies Tq == 1"
    Tk = keys.shape[1]
    E = encoded_input.shape[-1]

    block_b = _pick_block_b(B)
    grid = (B // block_b,)

    # Wrapper-side layout prep (cheap one-time XLA ops):
    qT = query.reshape(B, H).T                                          # (H, B)
    ke = jnp.concatenate([keys, encoded_input], axis=-1)                # (B, Tk, H+E)
    keT = jnp.transpose(ke, (1, 2, 0))                                  # (Tk, H+E, B)
    bias = jnp.where(padding_mask, -1e10, 0.0).astype(jnp.float32).T    # (Tk, B)
    wv = jnp.concatenate([wk, wcs], axis=1)                             # (H, H+E)

    outT = pl.pallas_call(
        _attention_kernel,
        out_shape=jax.ShapeDtypeStruct((H, B), jnp.float32),
        grid_spec=pltpu.PrefetchScalarGridSpec(
            num_scalar_prefetch=0,
            grid=grid,
            in_specs=[
                pl.BlockSpec((H, block_b), lambda i: (0, i)),
                pl.BlockSpec((Tk, H + E, block_b), lambda i: (0, 0, i)),
                pl.BlockSpec((Tk, block_b), lambda i: (0, i)),
                pl.BlockSpec((H, H), lambda i: (0, 0)),
                pl.BlockSpec((H, H + E), lambda i: (0, 0)),
            ],
            out_specs=pl.BlockSpec((H, block_b), lambda i: (0, i)),
        ),
        compiler_params=pltpu.CompilerParams(
            dimension_semantics=("parallel",)),
    )(qT, keT, bias, wq, wv)
    return outT.T                                                        # (B, H)


def attention_reference(query, keys, encoded_input, padding_mask, wq, wk, wcs):
    """Pure-JAX transliteration of the PyTorch forward, for correctness check."""
    q = query @ wq.T
    scores = jnp.einsum('bkh,bqh->bkq', keys, q)
    scores = scores - jnp.where(padding_mask, 1e10, 0.0)[:, :, None]
    weights = jax.nn.softmax(scores, axis=-2)
    values = encoded_input @ wcs.T + keys @ wk.T
    return jnp.sum(weights * values, axis=-2)


if __name__ == "__main__":
    B, Tq, Tk = 2, 1, 8
    H, E = 32, 16          # hidden_dim, embedding_dim

    key = jax.random.PRNGKey(0)
    k1, k2, k3, k4, k5, k6, k7 = jax.random.split(key, 7)

    query = jax.random.normal(k1, (B, Tq, H), dtype=jnp.float32)
    keys = jax.random.normal(k2, (B, Tk, H), dtype=jnp.float32)
    encoded_input = jax.random.normal(k3, (B, Tk, E), dtype=jnp.float32)
    padding_mask = jax.random.bernoulli(k4, 0.3, (B, Tk))

    # Deterministic parameter init (nn.Linear-style uniform, no bias).
    wq = jax.random.uniform(k5, (H, H), jnp.float32, -1.0, 1.0) / jnp.sqrt(H)
    wk = jax.random.uniform(k6, (H, H), jnp.float32, -1.0, 1.0) / jnp.sqrt(H)
    wcs = jax.random.uniform(k7, (H, E), jnp.float32, -1.0, 1.0) / jnp.sqrt(E)

    out = attention_forward(query, keys, encoded_input, padding_mask, wq, wk, wcs)
    out = jax.block_until_ready(out)

    ref = attention_reference(query, keys, encoded_input, padding_mask, wq, wk, wcs)
    np.testing.assert_allclose(np.asarray(out), np.asarray(ref), rtol=1e-4, atol=1e-4)

    print("KERNEL_OK")
</pallas_src>

<mosaic_0001>
module attributes {stable_mosaic.version = 11 : i64} {
  func.func @_attention_kernel(%arg0: i32, %arg1: memref<32x2xf32, #tpu.memory_space<vmem>>, %arg2: memref<8x48x2xf32, #tpu.memory_space<vmem>>, %arg3: memref<8x2xf32, #tpu.memory_space<vmem>>, %arg4: memref<32x32xf32, #tpu.memory_space<vmem>>, %arg5: memref<32x48xf32, #tpu.memory_space<vmem>>, %arg6: memref<32x2xf32, #tpu.memory_space<vmem>>) attributes {dimension_semantics = [#tpu.dimension_semantics<parallel>], iteration_bounds = array<i64: 1>, scalar_prefetch = 0 : i64, scratch_operands = 0 : i64, tpu.core_type = #tpu.core_type<tc>, window_params = [{transform_indices = @transform_0, window_bounds = array<i64: 32, 2>}, {transform_indices = @transform_1, window_bounds = array<i64: 8, 48, 2>}, {transform_indices = @transform_2, window_bounds = array<i64: 8, 2>}, {pipeline_mode = #tpu.pipeline_mode<synchronous>, transform_indices = @transform_3, window_bounds = array<i64: 32, 32>}, {pipeline_mode = #tpu.pipeline_mode<synchronous>, transform_indices = @transform_4, window_bounds = array<i64: 32, 48>}, {transform_indices = @transform_5, window_bounds = array<i64: 32, 2>}]} {
    %c0 = arith.constant 0 : index
    %c0_0 = arith.constant 0 : index
    %0 = vector.load %arg1[%c0, %c0_0] : memref<32x2xf32, #tpu.memory_space<vmem>>, vector<32x2xf32>
    %c0_1 = arith.constant 0 : index
    %c0_2 = arith.constant 0 : index
    %1 = vector.load %arg3[%c0_1, %c0_2] : memref<8x2xf32, #tpu.memory_space<vmem>>, vector<8x2xf32>
    %c0_3 = arith.constant 0 : index
    %c0_4 = arith.constant 0 : index
    %2 = vector.load %arg4[%c0_3, %c0_4] : memref<32x32xf32, #tpu.memory_space<vmem>>, vector<32x32xf32>
    %c0_5 = arith.constant 0 : index
    %c0_6 = arith.constant 0 : index
    %3 = vector.load %arg5[%c0_5, %c0_6] : memref<32x48xf32, #tpu.memory_space<vmem>>, vector<32x48xf32>
    %cst = arith.constant dense<0.000000e+00> : vector<32x2xf32>
    %4 = tpu.matmul %2, %0, %cst {dimension_numbers = #tpu.dot_dimension_numbers<[1], [0], [0], [1], [0, 0, 1, 1], [], []>} : vector<32x32xf32>, vector<32x2xf32>, vector<32x2xf32> -> vector<32x2xf32>
    %c0_7 = arith.constant 0 : index
    %c0_8 = arith.constant 0 : index
    %c0_9 = arith.constant 0 : index
    %5 = vector.load %arg2[%c0_7, %c0_8, %c0_9] : memref<8x48x2xf32, #tpu.memory_space<vmem>>, vector<1x48x2xf32>
    %6 = vector.shape_cast %5 : vector<1x48x2xf32> to vector<48x2xf32>
    %7 = vector.extract_strided_slice %6 {offsets = [0, 0], sizes = [32, 2], strides = [1, 1]} : vector<48x2xf32> to vector<32x2xf32>
    %8 = arith.mulf %7, %4 : vector<32x2xf32>
    %cst_10 = arith.constant dense<0.000000e+00> : vector<2xf32>
    %9 = vector.multi_reduction <add>, %8, %cst_10 [0] : vector<32x2xf32> to vector<2xf32>
    %10 = vector.shape_cast %9 : vector<2xf32> to vector<1x2xf32>
    %c1 = arith.constant 1 : index
    %c0_11 = arith.constant 0 : index
    %c0_12 = arith.constant 0 : index
    %11 = vector.load %arg2[%c1, %c0_11, %c0_12] : memref<8x48x2xf32, #tpu.memory_space<vmem>>, vector<1x48x2xf32>
    %12 = vector.shape_cast %11 : vector<1x48x2xf32> to vector<48x2xf32>
    %13 = vector.extract_strided_slice %12 {offsets = [0, 0], sizes = [32, 2], strides = [1, 1]} : vector<48x2xf32> to vector<32x2xf32>
    %14 = arith.mulf %13, %4 : vector<32x2xf32>
    %cst_13 = arith.constant dense<0.000000e+00> : vector<2xf32>
    %15 = vector.multi_reduction <add>, %14, %cst_13 [0] : vector<32x2xf32> to vector<2xf32>
    %16 = vector.shape_cast %15 : vector<2xf32> to vector<1x2xf32>
    %c2 = arith.constant 2 : index
    %c0_14 = arith.constant 0 : index
    %c0_15 = arith.constant 0 : index
    %17 = vector.load %arg2[%c2, %c0_14, %c0_15] : memref<8x48x2xf32, #tpu.memory_space<vmem>>, vector<1x48x2xf32>
    %18 = vector.shape_cast %17 : vector<1x48x2xf32> to vector<48x2xf32>
    %19 = vector.extract_strided_slice %18 {offsets = [0, 0], sizes = [32, 2], strides = [1, 1]} : vector<48x2xf32> to vector<32x2xf32>
    %20 = arith.mulf %19, %4 : vector<32x2xf32>
    %cst_16 = arith.constant dense<0.000000e+00> : vector<2xf32>
    %21 = vector.multi_reduction <add>, %20, %cst_16 [0] : vector<32x2xf32> to vector<2xf32>
    %22 = vector.shape_cast %21 : vector<2xf32> to vector<1x2xf32>
    %c3 = arith.constant 3 : index
    %c0_17 = arith.constant 0 : index
    %c0_18 = arith.constant 0 : index
    %23 = vector.load %arg2[%c3, %c0_17, %c0_18] : memref<8x48x2xf32, #tpu.memory_space<vmem>>, vector<1x48x2xf32>
    %24 = vector.shape_cast %23 : vector<1x48x2xf32> to vector<48x2xf32>
    %25 = vector.extract_strided_slice %24 {offsets = [0, 0], sizes = [32, 2], strides = [1, 1]} : vector<48x2xf32> to vector<32x2xf32>
    %26 = arith.mulf %25, %4 : vector<32x2xf32>
    %cst_19 = arith.constant dense<0.000000e+00> : vector<2xf32>
    %27 = vector.multi_reduction <add>, %26, %cst_19 [0] : vector<32x2xf32> to vector<2xf32>
    %28 = vector.shape_cast %27 : vector<2xf32> to vector<1x2xf32>
    %c4 = arith.constant 4 : index
    %c0_20 = arith.constant 0 : index
    %c0_21 = arith.constant 0 : index
    %29 = vector.load %arg2[%c4, %c0_20, %c0_21] : memref<8x48x2xf32, #tpu.memory_space<vmem>>, vector<1x48x2xf32>
    %30 = vector.shape_cast %29 : vector<1x48x2xf32> to vector<48x2xf32>
    %31 = vector.extract_strided_slice %30 {offsets = [0, 0], sizes = [32, 2], strides = [1, 1]} : vector<48x2xf32> to vector<32x2xf32>
    %32 = arith.mulf %31, %4 : vector<32x2xf32>
    %cst_22 = arith.constant dense<0.000000e+00> : vector<2xf32>
    %33 = vector.multi_reduction <add>, %32, %cst_22 [0] : vector<32x2xf32> to vector<2xf32>
    %34 = vector.shape_cast %33 : vector<2xf32> to vector<1x2xf32>
    %c5 = arith.constant 5 : index
    %c0_23 = arith.constant 0 : index
    %c0_24 = arith.constant 0 : index
    %35 = vector.load %arg2[%c5, %c0_23, %c0_24] : memref<8x48x2xf32, #tpu.memory_space<vmem>>, vector<1x48x2xf32>
    %36 = vector.shape_cast %35 : vector<1x48x2xf32> to vector<48x2xf32>
    %37 = vector.extract_strided_slice %36 {offsets = [0, 0], sizes = [32, 2], strides = [1, 1]} : vector<48x2xf32> to vector<32x2xf32>
    %38 = arith.mulf %37, %4 : vector<32x2xf32>
    %cst_25 = arith.constant dense<0.000000e+00> : vector<2xf32>
    %39 = vector.multi_reduction <add>, %38, %cst_25 [0] : vector<32x2xf32> to vector<2xf32>
    %40 = vector.shape_cast %39 : vector<2xf32> to vector<1x2xf32>
    %c6 = arith.constant 6 : index
    %c0_26 = arith.constant 0 : index
    %c0_27 = arith.constant 0 : index
    %41 = vector.load %arg2[%c6, %c0_26, %c0_27] : memref<8x48x2xf32, #tpu.memory_space<vmem>>, vector<1x48x2xf32>
    %42 = vector.shape_cast %41 : vector<1x48x2xf32> to vector<48x2xf32>
    %43 = vector.extract_strided_slice %42 {offsets = [0, 0], sizes = [32, 2], strides = [1, 1]} : vector<48x2xf32> to vector<32x2xf32>
    %44 = arith.mulf %43, %4 : vector<32x2xf32>
    %cst_28 = arith.constant dense<0.000000e+00> : vector<2xf32>
    %45 = vector.multi_reduction <add>, %44, %cst_28 [0] : vector<32x2xf32> to vector<2xf32>
    %46 = vector.shape_cast %45 : vector<2xf32> to vector<1x2xf32>
    %c7 = arith.constant 7 : index
    %c0_29 = arith.constant 0 : index
    %c0_30 = arith.constant 0 : index
    %47 = vector.load %arg2[%c7, %c0_29, %c0_30] : memref<8x48x2xf32, #tpu.memory_space<vmem>>, vector<1x48x2xf32>
    %48 = vector.shape_cast %47 : vector<1x48x2xf32> to vector<48x2xf32>
    %49 = vector.extract_strided_slice %48 {offsets = [0, 0], sizes = [32, 2], strides = [1, 1]} : vector<48x2xf32> to vector<32x2xf32>
    %50 = arith.mulf %49, %4 : vector<32x2xf32>
    %cst_31 = arith.constant dense<0.000000e+00> : vector<2xf32>
    %51 = vector.multi_reduction <add>, %50, %cst_31 [0] : vector<32x2xf32> to vector<2xf32>
    %52 = vector.shape_cast %51 : vector<2xf32> to vector<1x2xf32>
    %53 = tpu.concatenate %10, %16, %22, %28, %34, %40, %46, %52 in 0 : vector<1x2xf32>, vector<1x2xf32>, vector<1x2xf32>, vector<1x2xf32>, vector<1x2xf32>, vector<1x2xf32>, vector<1x2xf32>, vector<1x2xf32> -> vector<8x2xf32>
    %54 = arith.addf %53, %1 : vector<8x2xf32>
    %cst_32 = arith.constant dense<0xFF800000> : vector<2xf32>
    %55 = vector.multi_reduction <maximumf>, %54, %cst_32 [0] : vector<8x2xf32> to vector<2xf32>
    %56 = vector.shape_cast %55 : vector<2xf32> to vector<1x2xf32>
    %57 = vector.broadcast %56 : vector<1x2xf32> to vector<8x2xf32>
    %58 = arith.subf %54, %57 : vector<8x2xf32>
    %59 = math.exp %58 : vector<8x2xf32>
    %cst_33 = arith.constant dense<0.000000e+00> : vector<2xf32>
    %60 = vector.multi_reduction <add>, %59, %cst_33 [0] : vector<8x2xf32> to vector<2xf32>
    %61 = vector.shape_cast %60 : vector<2xf32> to vector<1x2xf32>
    %cst_34 = arith.constant 1.000000e+00 : f32
    %62 = vector.broadcast %cst_34 : f32 to vector<1x2xf32>
    %63 = arith.divf %62, %61 : vector<1x2xf32>
    %64 = vector.broadcast %63 : vector<1x2xf32> to vector<8x2xf32>
    %65 = arith.mulf %59, %64 : vector<8x2xf32>
    %66 = vector.extract_strided_slice %65 {offsets = [0, 0], sizes = [1, 2], strides = [1, 1]} : vector<8x2xf32> to vector<1x2xf32>
    %c0_35 = arith.constant 0 : index
    %c0_36 = arith.constant 0 : index
    %c0_37 = arith.constant 0 : index
    %67 = vector.load %arg2[%c0_35, %c0_36, %c0_37] : memref<8x48x2xf32, #tpu.memory_space<vmem>>, vector<1x48x2xf32>
    %68 = vector.shape_cast %67 : vector<1x48x2xf32> to vector<48x2xf32>
    %69 = vector.broadcast %66 : vector<1x2xf32> to vector<48x2xf32>
    %70 = arith.mulf %69, %68 : vector<48x2xf32>
    %71 = vector.extract_strided_slice %65 {offsets = [1, 0], sizes = [1, 2], strides = [1, 1]} : vector<8x2xf32> to vector<1x2xf32>
    %c1_38 = arith.constant 1 : index
    %c0_39 = arith.constant 0 : index
    %c0_40 = arith.constant 0 : index
    %72 = vector.load %arg2[%c1_38, %c0_39, %c0_40] : memref<8x48x2xf32, #tpu.memory_space<vmem>>, vector<1x48x2xf32>
    %73 = vector.shape_cast %72 : vector<1x48x2xf32> to vector<48x2xf32>
    %74 = vector.broadcast %71 : vector<1x2xf32> to vector<48x2xf32>
    %75 = arith.mulf %74, %73 : vector<48x2xf32>
    %76 = arith.addf %70, %75 : vector<48x2xf32>
    %77 = vector.extract_strided_slice %65 {offsets = [2, 0], sizes = [1, 2], strides = [1, 1]} : vector<8x2xf32> to vector<1x2xf32>
    %c2_41 = arith.constant 2 : index
    %c0_42 = arith.constant 0 : index
    %c0_43 = arith.constant 0 : index
    %78 = vector.load %arg2[%c2_41, %c0_42, %c0_43] : memref<8x48x2xf32, #tpu.memory_space<vmem>>, vector<1x48x2xf32>
    %79 = vector.shape_cast %78 : vector<1x48x2xf32> to vector<48x2xf32>
    %80 = vector.broadcast %77 : vector<1x2xf32> to vector<48x2xf32>
    %81 = arith.mulf %80, %79 : vector<48x2xf32>
    %82 = arith.addf %76, %81 : vector<48x2xf32>
    %83 = vector.extract_strided_slice %65 {offsets = [3, 0], sizes = [1, 2], strides = [1, 1]} : vector<8x2xf32> to vector<1x2xf32>
    %c3_44 = arith.constant 3 : index
    %c0_45 = arith.constant 0 : index
    %c0_46 = arith.constant 0 : index
    %84 = vector.load %arg2[%c3_44, %c0_45, %c0_46] : memref<8x48x2xf32, #tpu.memory_space<vmem>>, vector<1x48x2xf32>
    %85 = vector.shape_cast %84 : vector<1x48x2xf32> to vector<48x2xf32>
    %86 = vector.broadcast %83 : vector<1x2xf32> to vector<48x2xf32>
    %87 = arith.mulf %86, %85 : vector<48x2xf32>
    %88 = arith.addf %82, %87 : vector<48x2xf32>
    %89 = vector.extract_strided_slice %65 {offsets = [4, 0], sizes = [1, 2], strides = [1, 1]} : vector<8x2xf32> to vector<1x2xf32>
    %c4_47 = arith.constant 4 : index
    %c0_48 = arith.constant 0 : index
    %c0_49 = arith.constant 0 : index
    %90 = vector.load %arg2[%c4_47, %c0_48, %c0_49] : memref<8x48x2xf32, #tpu.memory_space<vmem>>, vector<1x48x2xf32>
    %91 = vector.shape_cast %90 : vector<1x48x2xf32> to vector<48x2xf32>
    %92 = vector.broadcast %89 : vector<1x2xf32> to vector<48x2xf32>
    %93 = arith.mulf %92, %91 : vector<48x2xf32>
    %94 = arith.addf %88, %93 : vector<48x2xf32>
    %95 = vector.extract_strided_slice %65 {offsets = [5, 0], sizes = [1, 2], strides = [1, 1]} : vector<8x2xf32> to vector<1x2xf32>
    %c5_50 = arith.constant 5 : index
    %c0_51 = arith.constant 0 : index
    %c0_52 = arith.constant 0 : index
    %96 = vector.load %arg2[%c5_50, %c0_51, %c0_52] : memref<8x48x2xf32, #tpu.memory_space<vmem>>, vector<1x48x2xf32>
    %97 = vector.shape_cast %96 : vector<1x48x2xf32> to vector<48x2xf32>
    %98 = vector.broadcast %95 : vector<1x2xf32> to vector<48x2xf32>
    %99 = arith.mulf %98, %97 : vector<48x2xf32>
    %100 = arith.addf %94, %99 : vector<48x2xf32>
    %101 = vector.extract_strided_slice %65 {offsets = [6, 0], sizes = [1, 2], strides = [1, 1]} : vector<8x2xf32> to vector<1x2xf32>
    %c6_53 = arith.constant 6 : index
    %c0_54 = arith.constant 0 : index
    %c0_55 = arith.constant 0 : index
    %102 = vector.load %arg2[%c6_53, %c0_54, %c0_55] : memref<8x48x2xf32, #tpu.memory_space<vmem>>, vector<1x48x2xf32>
    %103 = vector.shape_cast %102 : vector<1x48x2xf32> to vector<48x2xf32>
    %104 = vector.broadcast %101 : vector<1x2xf32> to vector<48x2xf32>
    %105 = arith.mulf %104, %103 : vector<48x2xf32>
    %106 = arith.addf %100, %105 : vector<48x2xf32>
    %107 = vector.extract_strided_slice %65 {offsets = [7, 0], sizes = [1, 2], strides = [1, 1]} : vector<8x2xf32> to vector<1x2xf32>
    %c7_56 = arith.constant 7 : index
    %c0_57 = arith.constant 0 : index
    %c0_58 = arith.constant 0 : index
    %108 = vector.load %arg2[%c7_56, %c0_57, %c0_58] : memref<8x48x2xf32, #tpu.memory_space<vmem>>, vector<1x48x2xf32>
    %109 = vector.shape_cast %108 : vector<1x48x2xf32> to vector<48x2xf32>
    %110 = vector.broadcast %107 : vector<1x2xf32> to vector<48x2xf32>
    %111 = arith.mulf %110, %109 : vector<48x2xf32>
    %112 = arith.addf %106, %111 : vector<48x2xf32>
    %cst_59 = arith.constant dense<0.000000e+00> : vector<32x2xf32>
    %113 = tpu.matmul %3, %112, %cst_59 {dimension_numbers = #tpu.dot_dimension_numbers<[1], [0], [0], [1], [0, 0, 1, 1], [], []>} : vector<32x48xf32>, vector<48x2xf32>, vector<32x2xf32> -> vector<32x2xf32>
    %c0_60 = arith.constant 0 : index
    %c0_61 = arith.constant 0 : index
    %114 = vector.load %arg6[%c0_60, %c0_61] : memref<32x2xf32, #tpu.memory_space<vmem>>, vector<32x2xf32>
    tpu.vector_store %arg6[%c0_60, %c0_61], %113 {strides = array<i32>} : memref<32x2xf32, #tpu.memory_space<vmem>>, vector<32x2xf32>,
    return
  }
  func.func @transform_0(%arg0: i32) -> (i32, i32) {
    %c0_i32 = arith.constant 0 : i32
    %c0_i32_0 = arith.constant 0 : i32
    return %c0_i32, %arg0 : i32, i32
  }
  func.func @transform_1(%arg0: i32) -> (i32, i32, i32) {
    %c0_i32 = arith.constant 0 : i32
    %c0_i32_0 = arith.constant 0 : i32
    %c0_i32_1 = arith.constant 0 : i32
    return %c0_i32, %c0_i32_0, %arg0 : i32, i32, i32
  }
  func.func @transform_2(%arg0: i32) -> (i32, i32) {
    %c0_i32 = arith.constant 0 : i32
    %c0_i32_0 = arith.constant 0 : i32
    return %c0_i32, %arg0 : i32, i32
  }
  func.func @transform_3(%arg0: i32) -> (i32, i32) {
    %c0_i32 = arith.constant 0 : i32
    %c0_i32_0 = arith.constant 0 : i32
    %c0_i32_1 = arith.constant 0 : i32
    return %c0_i32, %c0_i32_0 : i32, i32
  }
  func.func @transform_4(%arg0: i32) -> (i32, i32) {
    %c0_i32 = arith.constant 0 : i32
    %c0_i32_0 = arith.constant 0 : i32
    %c0_i32_1 = arith.constant 0 : i32
    return %c0_i32, %c0_i32_0 : i32, i32
  }
  func.func @transform_5(%arg0: i32) -> (i32, i32) {
    %c0_i32 = arith.constant 0 : i32
    %c0_i32_0 = arith.constant 0 : i32
    return %c0_i32, %arg0 : i32, i32
  }
}

</mosaic_0001>

<bundles_post_ra>
// kernel: tpu_custom_call.1
= control target key start
LH: loop header
LB: loop body
LE: loop exit
PB: predicated region body
PF: predicated region fallthrough
CT: control target
= control target key end

     0   :  { %vm33_vm0 = vcmask 261120   ;;  %vm141_vm1 = vcmask 15360   ;;  %vm323_vm2 = vcmask 1040384   ;;  %vm325_vm3 = vcmask 1041408   ;;  %s1220_s0 = inlined_call_operand.vmem [shape: f32[32,2], index: 0, kind: input, shape index: {}]   ;;  %s1221_s3 = inlined_call_operand.vmem [shape: f32[32,32], index: 3, kind: input, shape index: {}]   ;;  %s1222_s1 = inlined_call_operand.vmem [shape: f32[8,48,2], index: 1, kind: input, shape index: {}]   ;;  %s1223_s4 = inlined_call_operand.vmem [shape: f32[32,48], index: 4, kind: input, shape index: {}]   ;;  %s1224_s2 = inlined_call_operand.vmem [shape: f32[8,2], index: 2, kind: input, shape index: {}]   ;;  %s1225_s5 = inlined_call_operand.vmem [shape: f32[32,2], index: 5, kind: output, shape index: {}]  }
   0x1   :  { %v20_v0 = vld [vmem:[%s1220_s0] sm:$0xff]  ;;  %v21_v1 = vld [vmem:[%s1220_s0 + $0x8] sm:$0xff]  ;;  %v22_v2 = vld [vmem:[%s1220_s0 + $0x10] sm:$0xff]  ;;  %vm327_vm4 = vcmask 1042432   ;;  %vm329_vm5 = vcmask 1043456   ;;  %vm480_vm6 = vcmask 392192  }
   0x2   :  { %v686_v3 = vpack.c.bf16 %v21_v1, %v20_v0  ;;  %v23_v4 = vld [vmem:[%s1220_s0 + $0x18] sm:$0xff]  ;;  %v25_v5 = vld [vmem:[%s1221_s3] sm:$0xff]  ;;  %v26_v7 = vld [vmem:[%s1221_s3 + $0x8] sm:$0xff]  ;;  %vm331_vm7 = vcmask 1044480   ;;  %vm333_vm8 = vcmask 1045504   ;;  %vm335_vm9 = vcmask 1046528  }
   0x3   :  { %v690_v6 = vpack.c.bf16 %v23_v4, %v22_v2  ;;  %662 = vmatprep.mubr.msk.f32.mxu0 %vm33_vm0, %v25_v5  ;;  %v27_v8 = vld [vmem:[%s1221_s3 + $0x10] sm:$0xff]  ;;  %v28_v9 = vld [vmem:[%s1221_s3 + $0x18] sm:$0xff]  ;;  %v771_v10 = vld [vmem:[%s1222_s1 + $0x8] sm:$0xff] }
   0x4   :  { %687 = vmatprep.subr.bf16.mxu0 %v686_v3  ;;  %v776_v11 = vld [vmem:[%s1222_s1 + $0x38] sm:$0xff]  ;;  %v781_v12 = vld [vmem:[%s1222_s1] sm:$0xff]  ;;  %v786_v13 = vld [vmem:[%s1222_s1 + $0x68] sm:$0xff] }
   0x5   :  { %689 = vmatpush3.bf16.msra.mxu0 %v686_v3  ;;  %v791_v14 = vld [vmem:[%s1222_s1 + $0x98] sm:$0xff]  ;;  %v796_v15 = vld [vmem:[%s1222_s1 + $0x30] sm:$0xff]  ;;  %v801_v16 = vld [vmem:[%s1222_s1 + $0x60] sm:$0xff] }
   0x6   :  { %691 = vmatprep.subr.bf16.mxu0 %v690_v6  ;;  %v806_v17 = vld [vmem:[%s1222_s1 + $0x90] sm:$0xff]  ;;  %v815_v20 = vld [vmem:[%s1222_s1 + $0x18] sm:$0xff]  ;;  %v820_v21 = vld [vmem:[%s1222_s1 + $0x48] sm:$0xff] }
   0x7   :  { %v833_v26 = vld [vmem:[%s1222_s1 + $0x78] sm:$0xff]  ;;  %v838_v27 = vld [vmem:[%s1222_s1 + $0xa8] sm:$0xff]  ;;  %v861_v34 = vld [vmem:[%s1222_s1 + $0x10] sm:$0xff] }
   0x8   :  { %v843_v28 = vld [vmem:[%s1222_s1 + $0xd8] sm:$0xff]  ;;  %v856_v33 = vld [vmem:[%s1222_s1 + $0x108] sm:$0xff]  ;;  %v873_v41 = vld [vmem:[%s1222_s1 + $0x40] sm:$0xff] }
   0x9   :  { %693 = vmatpush3.bf16.msra.mxu0 %v690_v6  ;;  %v891_v50 = vld [vmem:[%s1222_s1 + $0x70] sm:$0xff]  ;;  %v902_v55 = vld [vmem:[%s1222_s1 + $0xa0] sm:$0xff] }
   0xa   :  { %v907_v56 = vld [vmem:[%s1222_s1 + $0xd0] sm:$0xff]  ;;  %v917_v61 = vld [vmem:[%s1222_s1 + $0x100] sm:$0xff] }
   0xb   :  { %v922_v62 = vld [vmem:[%s1222_s1 + $0x130] sm:$0xff] }
   0xc   :  { %663 = vmatmul.mubr.msk.f32.vlgmr.msra.gmra.mrb[0].mxu0 %vm33_vm0, %v26_v7  ;;  %v936_v7 = vld [vmem:[%s1222_s1 + $0xc0] sm:$0xff] }
   0xd   :  { %665 = vmatprep.mubr.msk.f32.mxu0 %vm33_vm0, %v27_v8  ;;  %v941_v8 = vld [vmem:[%s1222_s1 + $0xc8] sm:$0xff] }
  0x10   :  { %666 = vmatmul.mubr.msk.f32.gmra.mrb[2].mxu0 %vm33_vm0, %v28_v9 }
  0xdf   :  { %v808_v18 = vpop.f32.mrb[0].mxu0 }
  0xe0   :  { %v810_v19 = vpop.f32.mrb[1].mxu0  ;;  %v138_v22 = vmul.f32 %v808_v18, %v771_v10  ;;  %v163_v23 = vmul.f32 %v808_v18, %v776_v11  ;;  %v187_v24 = vmul.f32 %v808_v18, %v786_v13  ;;  %v211_v25 = vmul.f32 %v808_v18, %v791_v14 }
  0xe1   :  { %v137_v29 = vmul.f32 %v781_v12, %v810_v19  ;;  %v162_v30 = vmul.f32 %v796_v15, %v810_v19  ;;  %v186_v31 = vmul.f32 %v801_v16, %v810_v19  ;;  %v210_v32 = vmul.f32 %v806_v17, %v810_v19 }
  0xe2   :  { %v143_v35 = vsel %vm141_vm1, %v138_v22, 0.0  ;;  %v167_v36 = vsel %vm141_vm1, %v163_v23, 0.0  ;;  %v191_v37 = vsel %vm141_vm1, %v187_v24, 0.0  ;;  %v215_v38 = vsel %vm141_vm1, %v211_v25, 0.0  ;;  %v953_v25 = vld [vmem:[%s1222_s1 + $0xf0] sm:$0xff] }
  0xe3   :  { %v867_v39 = vpop.f32.mrb[2].mxu0  ;;  %v142_v40 = vsel %vm141_vm1, %v137_v29, 0.0  ;;  %v166_v42 = vsel %vm141_vm1, %v162_v30, 0.0  ;;  %v190_v43 = vsel %vm141_vm1, %v186_v31, 0.0  ;;  %v214_v44 = vsel %vm141_vm1, %v210_v32, 0.0 }
  0xe4   :  { %v140_v45 = vmul.f32 %v867_v39, %v815_v20  ;;  %v165_v46 = vmul.f32 %v867_v39, %v820_v21  ;;  %v189_v47 = vmul.f32 %v867_v39, %v833_v26  ;;  %v213_v48 = vmul.f32 %v867_v39, %v838_v27  ;;  %v886_v49 = vpop.f32.mrb[3].mxu0 }
  0xe5   :  { %v237_v51 = vmul.f32 %v867_v39, %v843_v28  ;;  %v261_v52 = vmul.f32 %v867_v39, %v856_v33  ;;  %v139_v53 = vmul.f32 %v861_v34, %v886_v49  ;;  %v144_v54 = vadd.f32 %v143_v35, %v142_v40 }
  0xe6   :  { %v195_v57 = vsel %vm141_vm1, %v189_v47, 0.0  ;;  %v219_v58 = vsel %vm141_vm1, %v213_v48, 0.0  ;;  %v147_v59 = vsel %vm141_vm1, %v140_v45, 0.0  ;;  %v164_v60 = vmul.f32 %v873_v41, %v886_v49  ;;  %v964_v45 = vld [vmem:[%s1222_s1 + $0xf8] sm:$0xff] }
  0xe7   :  { %v145_v63 = vsel %vm141_vm1, %v139_v53, 0.0  ;;  %v168_v0 = vadd.f32 %v167_v36, %v166_v42  ;;  %v171_v1 = vsel %vm141_vm1, %v165_v46, 0.0  ;;  %v188_v2 = vmul.f32 %v891_v50, %v886_v49 }
  0xe8   :  { %v146_v3 = vadd.f32 %v145_v63, %v144_v54  ;;  %v169_v4 = vsel %vm141_vm1, %v164_v60, 0.0  ;;  %v212_v5 = vmul.f32 %v902_v55, %v886_v49  ;;  %v236_v6 = vmul.f32 %v907_v56, %v886_v49 }
  0xe9   :  { %v170_v9 = vadd.f32 %v169_v4, %v168_v0  ;;  %v193_v22 = vsel %vm141_vm1, %v188_v2, 0.0  ;;  %v260_v23 = vmul.f32 %v917_v61, %v886_v49  ;;  %v948_v24 = vmul.f32 %v922_v62, %v886_v49 }
  0xea   :  { %v148_v29 = vadd.f32 %v147_v59, %v146_v3  ;;  %v217_v30 = vsel %vm141_vm1, %v212_v5, 0.0  ;;  %v241_v31 = vsel %vm141_vm1, %v236_v6, 0.0  ;;  %v192_v32 = vadd.f32 %v191_v37, %v190_v43  ;;  %v978_v3 = vld [vmem:[%s1222_s1 + $0x120] sm:$0xff] }
  0xeb   :  { %v172_v35 = vadd.f32 %v171_v1, %v170_v9  ;;  %v216_v36 = vadd.f32 %v215_v38, %v214_v44  ;;  %v234_v40 = vmul.f32 %v936_v7, %v810_v19  ;;  %v235_v42 = vmul.f32 %v808_v18, %v941_v8  ;;  %v984_v9 = vld [vmem:[%s1222_s1 + $0x128] sm:$0xff] }
  0xec   :  { %v149_v46 = vrot.slane %v148_v29, 4  ;;  %v194_v47 = vadd.f32 %v193_v22, %v192_v32  ;;  %v243_v48 = vsel %vm141_vm1, %v237_v51, 0.0  ;;  %v258_v37 = vmul.f32 %v953_v25, %v810_v19 }
  0xed   :  { %v173_v43 = vrot.slane %v172_v35, 4  ;;  %v218_v38 = vadd.f32 %v217_v30, %v216_v36  ;;  %v238_v44 = vsel %vm141_vm1, %v234_v40, 0.0  ;;  %v239_v53 = vsel %vm141_vm1, %v235_v42, 0.0  ;;  %v990_v30 = vld [vmem:[%s1222_s1 + $0x138] sm:$0xff] }
  0xee   :  { %v150_v54 = vadd.f32 %v149_v46, %v148_v29  ;;  %v196_v59 = vadd.f32 %v195_v57, %v194_v47  ;;  %v240_v60 = vadd.f32 %v239_v53, %v238_v44  ;;  %v259_v63 = vmul.f32 %v808_v18, %v964_v45 }
  0xef   :  { %v174_v0 = vadd.f32 %v173_v43, %v172_v35  ;;  %v220_v1 = vadd.f32 %v219_v58, %v218_v38  ;;  %v262_v51 = vsel %vm141_vm1, %v258_v37, 0.0  ;;  %v265_v2 = vsel %vm141_vm1, %v260_v23, 0.0 }
  0xf0   :  { %v151_v4 = vrot.slane %v150_v54, 2  ;;  %v197_v5 = vrot.slane %v196_v59, 4  ;;  %v242_v6 = vadd.f32 %v241_v31, %v240_v60  ;;  %v263_v57 = vsel %vm141_vm1, %v259_v63, 0.0 }
  0xf1   :  { %v175_v58 = vrot.slane %v174_v0, 2  ;;  %v221_v22 = vrot.slane %v220_v1, 4  ;;  %v264_v29 = vadd.f32 %v263_v57, %v262_v51  ;;  %v267_v23 = vsel %vm141_vm1, %v261_v52, 0.0 }
  0xf2   :  { %v152_v32 = vadd.f32 %v151_v4, %v150_v54  ;;  %v198_v35 = vadd.f32 %v197_v5, %v196_v59  ;;  %v244_v31 = vadd.f32 %v243_v48, %v242_v6  ;;  %v282_v36 = vmul.f32 %v978_v3, %v810_v19  ;;  %v1003_v5 = vld [vmem:[%s1222_s1 + $0x150] sm:$0xff]  ;;  %v1008_v6 = vld [vmem:[%s1222_s1 + $0x158] sm:$0xff] }
  0xf3   :  { %v176_v40 = vadd.f32 %v175_v58, %v174_v0  ;;  %v222_v42 = vadd.f32 %v221_v22, %v220_v1  ;;  %v266_v46 = vadd.f32 %v265_v2, %v264_v29  ;;  %v283_v47 = vmul.f32 %v808_v18, %v984_v9 }
  0xf4   :  { %v153_v37 = vrot.slane %v152_v32, 1  ;;  %v199_v52 = vrot.slane %v198_v35, 2  ;;  %v245_v43 = vrot.slane %v244_v31, 4  ;;  %v285_v38 = vmul.f32 %v867_v39, %v990_v30 }
  0xf5   :  { %v177_v44 = vrot.slane %v176_v40, 1  ;;  %v223_v53 = vrot.slane %v222_v42, 2  ;;  %v268_v48 = vadd.f32 %v267_v23, %v266_v46  ;;  %v286_v54 = vsel %vm141_vm1, %v282_v36, 0.0  ;;  %v1016_v23 = vld [vmem:[%s1222_s1 + $0x160] sm:$0xff] }
  0xf6   :  { %v154_v59 = vadd.f32 %v153_v37, %v152_v32  ;;  %v200_v60 = vadd.f32 %v199_v52, %v198_v35  ;;  %v246_v63 = vadd.f32 %v245_v43, %v244_v31  ;;  %v287_v0 = vsel %vm141_vm1, %v283_v47, 0.0 }
  0xf7   :  { %v178_v1 = vadd.f32 %v177_v44, %v176_v40  ;;  %v224_v51 = vadd.f32 %v223_v53, %v222_v42  ;;  %v269_v2 = vrot.slane %v268_v48, 4  ;;  %v288_v4 = vadd.f32 %v287_v0, %v286_v54  ;;  %v1022_v40 = vld [vmem:[%s1222_s1 + $0x168] sm:$0xff] }
  0xf8   :  { %v201_v57 = vrot.slane %v200_v60, 1  ;;  %v247_v58 = vrot.slane %v246_v63, 2  ;;  %v289_v22 = vsel %vm141_vm1, %v948_v24, 0.0  ;;  %v291_v29 = vsel %vm141_vm1, %v285_v38, 0.0 }
  0xf9   :  { %v324_v32 = vsel %vm323_vm2, %v154_v59, %v178_v1  ;;  %v225_v35 = vrot.slane %v224_v51, 1  ;;  %v270_v31 = vadd.f32 %v269_v2, %v268_v48  ;;  %v290_v36 = vadd.f32 %v289_v22, %v288_v4 }
  0xfa   :  { %v202_v42 = vadd.f32 %v201_v57, %v200_v60  ;;  %v248_v46 = vadd.f32 %v247_v58, %v246_v63  ;;  %v306_v24 = vmul.f32 %v1003_v5, %v810_v19  ;;  %v307_v47 = vmul.f32 %v808_v18, %v1008_v6  ;;  %v29_v19 = vld [vmem:[%s1223_s4] sm:$0xff] }
  0xfb   :  { %v226_v37 = vadd.f32 %v225_v35, %v224_v51  ;;  %v271_v52 = vrot.slane %v270_v31, 2  ;;  %v292_v43 = vadd.f32 %v291_v29, %v290_v36  ;;  %v308_v38 = vmul.f32 %v1016_v23, %v886_v49  ;;  %680 = vmatprep.mubr.msk.f32.mxu1 %vm480_vm6, %v29_v19 }
  0xfc   :  { %v249_v44 = vrot.slane %v248_v46, 1  ;;  %v309_v53 = vmul.f32 %v867_v39, %v1022_v40  ;;  %v310_v48 = vsel %vm141_vm1, %v306_v24, 0.0  ;;  %v311_v54 = vsel %vm141_vm1, %v307_v47, 0.0 }
  0xfd   :  { %v272_v59 = vadd.f32 %v271_v52, %v270_v31  ;;  %v293_v18 = vrot.slane %v292_v43, 4  ;;  %v312_v60 = vadd.f32 %v311_v54, %v310_v48  ;;  %v313_v63 = vsel %vm141_vm1, %v308_v38, 0.0 }
  0xfe   :  { %v250_v0 = vadd.f32 %v249_v44, %v248_v46  ;;  %v326_v49 = vsel %vm325_vm3, %v324_v32, %v202_v42  ;;  %v315_v4 = vsel %vm141_vm1, %v309_v53, 0.0 }
  0xff   :  { %v273_v1 = vrot.slane %v272_v59, 1  ;;  %v294_v51 = vadd.f32 %v293_v18, %v292_v43  ;;  %v314_v39 = vadd.f32 %v313_v63, %v312_v60  ;;  %v328_v2 = vsel %vm327_vm4, %v326_v49, %v226_v37  ;;  %v24_v43 = vld [vmem:[%s1224_s2] sm:$0xff] }
 0x100   :  { %v330_v57 = vsel %vm329_vm5, %v328_v2, %v250_v0 }
 0x101   :  { %v274_v58 = vadd.f32 %v273_v1, %v272_v59  ;;  %v295_v22 = vrot.slane %v294_v51, 2  ;;  %v316_v29 = vadd.f32 %v315_v4, %v314_v39 }
 0x103   :  { %v296_v35 = vadd.f32 %v295_v22, %v294_v51  ;;  %v317_v31 = vrot.slane %v316_v29, 4  ;;  %v332_v36 = vsel %vm331_vm7, %v330_v57, %v274_v58 }
 0x105   :  { %v297_v32 = vrot.slane %v296_v35, 1  ;;  %v318_v42 = vadd.f32 %v317_v31, %v316_v29  ;;  %v358_v29 = vlaneseq }
 0x107   :  { %v298_v46 = vadd.f32 %v297_v32, %v296_v35  ;;  %v319_v24 = vrot.slane %v318_v42, 2  ;;  %v359_v35 = vshrl.u32 %v358_v29, 7 }
 0x109   :  { %v320_v47 = vadd.f32 %v319_v24, %v318_v42  ;;  %v334_v37 = vsel %vm333_vm8, %v332_v36, %v298_v46  ;;  %v360_v31 = vsub.s32 0, %v359_v35  ;;  %v370_v36 = vsub.s32 1, %v359_v35 }
 0x10a   :  { %v386_v32 = vsub.s32 2, %v359_v35  ;;  %v402_v42 = vsub.s32 3, %v359_v35  ;;  %v418_v24 = vsub.s32 4, %v359_v35 }
 0x10b   :  { %v321_v52 = vrot.slane %v320_v47, 1 }
 0x10d   :  { %v322_v38 = vadd.f32 %v321_v52, %v320_v47  ;;  %v434_v47 = vsub.s32 5, %v359_v35  ;;  %v466_v52 = vsub.s32 7, %v359_v35 }
 0x10f   :  { %v336_v44 = vsel %vm335_vm9, %v334_v37, %v322_v38  ;;  %v450_v37 = vsub.s32 6, %v359_v35 }
 0x110   :  { %v337_v53 = vadd.f32 %v336_v44, %v24_v43 }
 0x112   :  { %v338_v48 = vsel %vm141_vm1, %v337_v53, -inf }
 0x113   :  { %v339_v54 = vrot.slane %v338_v48, 4 }
 0x115   :  { %v340_v19 = vmax.f32 %v338_v48, %v339_v54 }
 0x117   :  { %v341_v59 = vrot.slane %v340_v19, 2 }
 0x119   :  { %v342_v18 = vmax.f32 %v340_v19, %v341_v59 }
 0x11b   :  { %v343_v60 = vrot.slane %v342_v18, 1 }
 0x11d   :  { %v344_v63 = vmax.f32 %v342_v18, %v343_v60 }
 0x11f   :  { %v345_v0 = vsub.f32 %v337_v53, %v344_v63 }
 0x121   :  { %v346_v49 = vmul.f32 1.442695, %v345_v0 }
 0x123   :  { %706 = vpow2.f32 %v346_v49 }
 0x12d   :  { %v707_v1 = vpop.eup %706 }
 0x12e   :  { %v348_v51 = vsel %vm141_vm1, %v707_v1, 0.0 }
 0x12f   :  { %v349_v39 = vrot.slane %v348_v51, 4 }
 0x131   :  { %v350_v2 = vadd.f32 %v349_v39, %v348_v51 }
 0x133   :  { %v351_v4 = vrot.slane %v350_v2, 2 }
 0x135   :  { %v352_v57 = vadd.f32 %v351_v4, %v350_v2 }
 0x137   :  { %v353_v58 = vrot.slane %v352_v57, 1 }
 0x139   :  { %v354_v22 = vadd.f32 %v353_v58, %v352_v57 }
 0x13b   :  { %708 = vrcp.f32 %v354_v22 }
 0x145   :  { %v709_v46 = vpop.eup %708 }
 0x146   :  { %v357_v43 = vmul.f32 %v709_v46, %v707_v1 }
 0x148   :  { %v1048_v38 = vrot.slane %v357_v43, %v360_v31  ;;  %v1050_v44 = vrot.slane %v357_v43, %v370_v36  ;;  %v1052_v53 = vrot.slane %v357_v43, %v386_v32  ;;  %v1054_v48 = vrot.slane %v357_v43, %v402_v42 }
 0x149   :  { %v1056_v54 = vrot.slane %v357_v43, %v418_v24  ;;  %v1058_v19 = vrot.slane %v357_v43, %v434_v47  ;;  %v1060_v59 = vrot.slane %v357_v43, %v450_v37  ;;  %v1062_v18 = vrot.slane %v357_v43, %v466_v52 }
 0x14a   :  { %v362_v60 = vmul.f32 %v1048_v38, %v781_v12  ;;  %v363_v63 = vmul.f32 %v1048_v38, %v771_v10  ;;  %v372_v0 = vmul.f32 %v796_v15, %v1050_v44  ;;  %v373_v49 = vmul.f32 %v776_v11, %v1050_v44 }
 0x14b   :  { %v388_v1 = vmul.f32 %v801_v16, %v1052_v53  ;;  %v389_v51 = vmul.f32 %v786_v13, %v1052_v53  ;;  %v404_v39 = vmul.f32 %v806_v17, %v1054_v48  ;;  %v405_v10 = vmul.f32 %v791_v14, %v1054_v48 }
 0x14c   :  { %v378_v2 = vadd.f32 %v372_v0, %v362_v60  ;;  %v379_v12 = vadd.f32 %v373_v49, %v363_v63  ;;  %v420_v15 = vmul.f32 %v936_v7, %v1056_v54  ;;  %v421_v11 = vmul.f32 %v941_v8, %v1056_v54 }
 0x14d   :  { %v436_v16 = vmul.f32 %v953_v25, %v1058_v19  ;;  %v437_v13 = vmul.f32 %v964_v45, %v1058_v19  ;;  %v452_v17 = vmul.f32 %v978_v3, %v1060_v59  ;;  %v453_v14 = vmul.f32 %v984_v9, %v1060_v59 }
 0x14e   :  { %v394_v4 = vadd.f32 %v388_v1, %v378_v2  ;;  %v395_v57 = vadd.f32 %v389_v51, %v379_v12  ;;  %v468_v7 = vmul.f32 %v1003_v5, %v1062_v18  ;;  %v364_v8 = vmul.f32 %v1048_v38, %v861_v34 }
 0x14f   :  { %v365_v25 = vmul.f32 %v1048_v38, %v815_v20  ;;  %v374_v45 = vmul.f32 %v873_v41, %v1050_v44  ;;  %v375_v3 = vmul.f32 %v820_v21, %v1050_v44  ;;  %v469_v9 = vmul.f32 %v1008_v6, %v1062_v18 }
 0x150   :  { %v410_v58 = vadd.f32 %v404_v39, %v394_v4  ;;  %v411_v22 = vadd.f32 %v405_v10, %v395_v57  ;;  %v390_v5 = vmul.f32 %v891_v50, %v1052_v53  ;;  %v391_v34 = vmul.f32 %v833_v26, %v1052_v53  ;;  %v135_v26 = vld [vmem:[%s1222_s1 + $0x20] sm:$0xff] }
 0x151   :  { %v380_v29 = vadd.f32 %v374_v45, %v364_v8  ;;  %v381_v35 = vadd.f32 %v375_v3, %v365_v25  ;;  %v406_v20 = vmul.f32 %v902_v55, %v1054_v48  ;;  %v407_v21 = vmul.f32 %v838_v27, %v1054_v48  ;;  %v136_v55 = vld [vmem:[%s1222_s1 + $0x28] sm:$0xff]  ;;  %v618_v45 = vld [vmem:[%s1222_s1 + $0x110] sm:$0xff] }
 0x152   :  { %v426_v41 = vadd.f32 %v420_v15, %v410_v58  ;;  %v427_v31 = vadd.f32 %v421_v11, %v411_v22  ;;  %v422_v36 = vmul.f32 %v907_v56, %v1056_v54  ;;  %v423_v50 = vmul.f32 %v843_v28, %v1056_v54  ;;  %v594_v28 = vld [vmem:[%s1222_s1 + $0x50] sm:$0xff]  ;;  %v619_v22 = vld [vmem:[%s1222_s1 + $0x118] sm:$0xff] }
 0x153   :  { %v396_v6 = vadd.f32 %v390_v5, %v380_v29  ;;  %v397_v32 = vadd.f32 %v391_v34, %v381_v35  ;;  %v438_v42 = vmul.f32 %v917_v61, %v1058_v19  ;;  %v439_v56 = vmul.f32 %v856_v33, %v1058_v19  ;;  %v595_v61 = vld [vmem:[%s1222_s1 + $0x58] sm:$0xff]  ;;  %v600_v33 = vld [vmem:[%s1222_s1 + $0x80] sm:$0xff] }
 0x154   :  { %v442_v27 = vadd.f32 %v436_v16, %v426_v41  ;;  %v443_v46 = vadd.f32 %v437_v13, %v427_v31  ;;  %v454_v24 = vmul.f32 %v922_v62, %v1060_v59  ;;  %v455_v52 = vmul.f32 %v990_v30, %v1060_v59  ;;  %v601_v62 = vld [vmem:[%s1222_s1 + $0x88] sm:$0xff]  ;;  %v606_v30 = vld [vmem:[%s1222_s1 + $0xb0] sm:$0xff]  ;;  %v612_v13 = vld [vmem:[%s1222_s1 + $0xe0] sm:$0xff] }
 0x155   :  { %v412_v47 = vadd.f32 %v406_v20, %v396_v6  ;;  %v413_v37 = vadd.f32 %v407_v21, %v397_v32  ;;  %v470_v43 = vmul.f32 %v1016_v23, %v1062_v18  ;;  %v366_v0 = vmul.f32 %v1048_v38, %v135_v26  ;;  %v607_v23 = vld [vmem:[%s1222_s1 + $0xb8] sm:$0xff]  ;;  %v624_v34 = vld [vmem:[%s1222_s1 + $0x140] sm:$0xff]  ;;  %v625_v20 = vld [vmem:[%s1222_s1 + $0x148] sm:$0xff] }
 0x156   :  { %v458_v60 = vadd.f32 %v452_v17, %v442_v27  ;;  %v459_v63 = vadd.f32 %v453_v14, %v443_v46  ;;  %v367_v49 = vmul.f32 %v1048_v38, %v136_v55  ;;  %v376_v39 = vmul.f32 %v594_v28, %v1050_v44  ;;  %v613_v17 = vld [vmem:[%s1222_s1 + $0xe8] sm:$0xff]  ;;  %v630_v6 = vld [vmem:[%s1222_s1 + $0x170] sm:$0xff]  ;;  %v631_v32 = vld [vmem:[%s1222_s1 + $0x178] sm:$0xff] }
 0x157   :  { %v428_v1 = vadd.f32 %v422_v36, %v412_v47  ;;  %v429_v51 = vadd.f32 %v423_v50, %v413_v37  ;;  %v377_v2 = vmul.f32 %v595_v61, %v1050_v44  ;;  %v392_v15 = vmul.f32 %v600_v33, %v1052_v53  ;;  %v30_v47 = vld [vmem:[%s1223_s4 + $0x8] sm:$0xff] }
 0x158   :  { %v474_v12 = vadd.f32 %v468_v7, %v458_v60  ;;  %v475_v10 = vadd.f32 %v469_v9, %v459_v63  ;;  %v393_v38 = vmul.f32 %v601_v62, %v1052_v53  ;;  %v382_v4 = vadd.f32 %v376_v39, %v366_v0 }
 0x159   :  { %v444_v11 = vadd.f32 %v438_v42, %v428_v1  ;;  %v445_v16 = vadd.f32 %v439_v56, %v429_v51  ;;  %v383_v57 = vadd.f32 %v377_v2, %v367_v49  ;;  %v471_v44 = vmul.f32 %v1022_v40, %v1062_v18 }
 0x15a   :  { %v694_v14 = vpack.c.bf16 %v475_v10, %v474_v12  ;;  %v408_v7 = vmul.f32 %v606_v30, %v1054_v48  ;;  %v409_v53 = vmul.f32 %v607_v23, %v1054_v48  ;;  %v398_v3 = vadd.f32 %v392_v15, %v382_v4 }
 0x15b   :  { %v460_v8 = vadd.f32 %v454_v24, %v444_v11  ;;  %v461_v25 = vadd.f32 %v455_v52, %v445_v16  ;;  %v399_v58 = vadd.f32 %v393_v38, %v383_v57  ;;  %v424_v9 = vmul.f32 %v612_v13, %v1056_v54 }
 0x15c   :  { %695 = vmatprep.subr.bf16.mxu1 %v694_v14  ;;  %v425_v40 = vmul.f32 %v613_v17, %v1056_v54  ;;  %v414_v29 = vadd.f32 %v408_v7, %v398_v3  ;;  %v440_v41 = vmul.f32 %v618_v45, %v1058_v19  ;;  %v441_v54 = vmul.f32 %v619_v22, %v1058_v19 }
 0x15d   :  { %697 = vmatpush3.bf16.msra.mxu1 %v694_v14  ;;  %v476_v5 = vadd.f32 %v470_v43, %v460_v8  ;;  %v477_v48 = vadd.f32 %v471_v44, %v461_v25  ;;  %v415_v35 = vadd.f32 %v409_v53, %v399_v58  ;;  %v456_v26 = vmul.f32 %v624_v34, %v1060_v59 }
 0x15e   :  { %v430_v21 = vadd.f32 %v424_v9, %v414_v29  ;;  %v457_v55 = vmul.f32 %v625_v20, %v1060_v59  ;;  %v472_v19 = vmul.f32 %v630_v6, %v1062_v18  ;;  %v473_v56 = vmul.f32 %v631_v32, %v1062_v18  ;;  %v31_v59 = vld [vmem:[%s1223_s4 + $0x10] sm:$0xff]  ;;  %v32_v18 = vld [vmem:[%s1223_s4 + $0x18] sm:$0xff] }
 0x15f   :  { %v698_v31 = vpack.c.bf16 %v477_v48, %v476_v5  ;;  %v431_v36 = vadd.f32 %v425_v40, %v415_v35 }
 0x160   :  { %v446_v50 = vadd.f32 %v440_v41, %v430_v21 }
 0x161   :  { %699 = vmatprep.subr.bf16.mxu1 %v698_v31  ;;  %v447_v42 = vadd.f32 %v441_v54, %v431_v36 }
 0x162   :  { %701 = vmatpush3.bf16.msra.mxu1 %v698_v31  ;;  %v462_v27 = vadd.f32 %v456_v26, %v446_v50 }
 0x163   :  { %v463_v46 = vadd.f32 %v457_v55, %v447_v42 }
 0x164   :  { %v478_v24 = vadd.f32 %v472_v19, %v462_v27 }
 0x165   :  { %v479_v28 = vadd.f32 %v473_v56, %v463_v46 }
 0x167   :  { %v702_v61 = vpack.c.bf16 %v479_v28, %v478_v24 }
 0x169   :  { %703 = vmatprep.subr.bf16.mxu1 %v702_v61 }
 0x16a   :  { %705 = vmatpush3.bf16.msra.mxu1 %v702_v61 }
 0x16d   :  { %681 = vmatmul.mubr.msk.f32.vlgmr.msra.gmra.mrb[0].mxu1 %vm480_vm6, %v30_v47 }
 0x16e   :  { %683 = vmatprep.mubr.msk.f32.mxu1 %vm480_vm6, %v31_v59 }
 0x171   :  { %684 = vmatmul.mubr.msk.f32.gmra.mrb[2].mxu1 %vm480_vm6, %v32_v18 }
 0x240   :  { %v682_v37 = vpop.f32.mrb[0].mxu1 }
 0x241   :  { %579 = vst.msk [vmem:[%s1225_s5 + $0x8] sm:$0xff] %vm141_vm1, %v682_v37  ;;  %v559_v52 = vpop.f32.mrb[1].mxu1 }
 0x242   :  { %578 = vst.msk [vmem:[%s1225_s5] sm:$0xff] %vm141_vm1, %v559_v52 }
 0x244   :  { %v685_v43 = vpop.f32.mrb[2].mxu1 }
 0x245   :  { %581 = vst.msk [vmem:[%s1225_s5 + $0x18] sm:$0xff] %vm141_vm1, %v685_v43  ;;  %v569_v33 = vpop.f32.mrb[3].mxu1 }
 0x246   :  { %580 = vst.msk [vmem:[%s1225_s5 + $0x10] sm:$0xff] %vm141_vm1, %v569_v33 }

</bundles_post_ra>
